<compile_context>
chip_gen: v7x
topology: tpu7x:2x2x1
jax: 0.10.0
libtpu: 0.0.40
codegen_flags: <defaults>
</compile_context>

<pallas_src>
import functools

import jax
import jax.numpy as jnp
import numpy as np
from jax.experimental import pallas as pl
from jax.experimental.pallas import tpu as pltpu

EPS = 1e-5
LANES = 128


# ---------------------------------------------------------------------------
# helpers
# ---------------------------------------------------------------------------
def _vmem_limit_bytes():
    # ~3/4 of physical VMEM: v7x 64 MiB -> 48 MiB, v5e/v6e 128 MiB -> 96 MiB.
    cap = 64 * 1024 * 1024
    try:
        cap = int(pltpu.get_tpu_info().vmem_capacity_bytes)
    except Exception:
        pass
    return int(min(cap * 3 // 4, 100 * 1024 * 1024))


def _tile(n, want, quantum):
    t = min(want, n)
    if n % t != 0:
        t = n
    assert t == n or t % quantum == 0, (n, want, quantum)
    return t


def _pad2(a, rows, cols):
    return jnp.zeros((rows, cols), a.dtype).at[: a.shape[0], : a.shape[1]].set(a)


def _bn_fold(stats, bn_w, bn_b, n, hp):
    """Reduce per-row-tile partial stats and fold BN affine into scale/shift."""
    tot = jnp.sum(stats.reshape(-1, 8, hp), axis=0)        # [8, hp] (rows 0,1 used)
    mean = tot[0] / n
    var = jnp.maximum(tot[1] / n - mean * mean, 0.0)       # biased var (training BN)
    scale = bn_w * jax.lax.rsqrt(var + EPS)                # [1, hp]
    shift = bn_b - mean[None, :] * scale                   # [1, hp]
    return scale, shift


# ---------------------------------------------------------------------------
# Kernel 1: one GraphConvolution layer  h = adj @ (bn_relu?(inp) @ W)
#           + single-pass partial BatchNorm statistics per row tile.
# grid = (row_tiles, k_tiles); k = contraction over adj columns (arbitrary).
# ---------------------------------------------------------------------------
def _gc_kernel(in_ref, adj_ref, w_ref, scale_ref, shift_ref,
               h_ref, stats_ref, acc_ref, *, fuse_bn_input):
    k = pl.program_id(1)

    @pl.when(k == 0)
    def _():
        acc_ref[...] = jnp.zeros_like(acc_ref)

    xin = in_ref[...]
    if fuse_bn_input:
        # previous layer's BN (pre-folded scale/shift) + ReLU fused into the read
        xin = jnp.maximum(
            xin.astype(jnp.float32) * scale_ref[...] + shift_ref[...], 0.0
        ).astype(in_ref.dtype)

    support = jnp.dot(xin, w_ref[...], preferred_element_type=jnp.float32)
    acc_ref[...] += jnp.dot(adj_ref[...], support.astype(adj_ref.dtype),
                            preferred_element_type=jnp.float32)

    @pl.when(k == pl.num_programs(1) - 1)
    def _():
        hblk = acc_ref[...]
        h_ref[...] = hblk.astype(h_ref.dtype)
        # one-pass stats: sum and sum-of-squares together (var = E[x^2]-E[x]^2)
        s = jnp.sum(hblk, axis=0, keepdims=True)
        ss = jnp.sum(hblk * hblk, axis=0, keepdims=True)
        pad = jnp.zeros((6, hblk.shape[1]), jnp.float32)
        stats_ref[...] = jnp.concatenate([s, ss, pad], axis=0)


def _gc_layer(inp, adj, w, scale, shift, *, tm, tk, fuse_bn, vmem_limit):
    n = adj.shape[0]
    f_in = inp.shape[1]
    hp = w.shape[1]
    n_rows, n_k = n // tm, n // tk
    kernel = functools.partial(_gc_kernel, fuse_bn_input=fuse_bn)
    return pl.pallas_call(
        kernel,
        out_shape=(jax.ShapeDtypeStruct((n, hp), inp.dtype),
                   jax.ShapeDtypeStruct((n_rows * 8, hp), jnp.float32)),
        grid=(n_rows, n_k),
        in_specs=[
            pl.BlockSpec((tk, f_in), lambda i, k: (k, 0)),   # inp rows = adj cols
            pl.BlockSpec((tm, tk), lambda i, k: (i, k)),     # adj tile (streamed)
            pl.BlockSpec((f_in, hp), lambda i, k: (0, 0)),   # weight (resident)
            pl.BlockSpec((1, hp), lambda i, k: (0, 0)),      # BN scale (prev layer)
            pl.BlockSpec((1, hp), lambda i, k: (0, 0)),      # BN shift (prev layer)
        ],
        out_specs=(
            pl.BlockSpec((tm, hp), lambda i, k: (i, 0)),     # raw h rows
            pl.BlockSpec((8, hp), lambda i, k: (i, 0)),      # partial BN stats
        ),
        scratch_shapes=[pltpu.VMEM((tm, hp), jnp.float32)],
        compiler_params=pltpu.CompilerParams(
            dimension_semantics=("parallel", "arbitrary"),
            vmem_limit_bytes=vmem_limit),
    )(inp, adj, w, scale, shift)


# ---------------------------------------------------------------------------
# Kernel 2: BN2+ReLU, attention with online softmax, residual adj@H fused.
# grid = (q_row_tiles, kv_tiles); kv is "arbitrary", q rows "parallel".
# ---------------------------------------------------------------------------
def _attn_kernel(h2q_ref, h2k_ref, adj_ref, scale_ref, shift_ref,
                 mlr_ref, whg_ref, gamma_ref, out_ref,
                 hm_scr, m_scr, l_scr, acc_att, acc_res, *, approx_recip):
    kv = pl.program_id(1)
    mm = adj_ref.dtype

    def bn_relu(raw):
        return jnp.maximum(
            raw.astype(jnp.float32) * scale_ref[...] + shift_ref[...], 0.0)

    @pl.when(kv == 0)
    def _():
        hq = bn_relu(h2q_ref[...]).astype(mm)
        hm_scr[...] = jnp.dot(hq, mlr_ref[...],
                              preferred_element_type=jnp.float32).astype(mm)
        m_scr[...] = jnp.full_like(m_scr, -jnp.inf)
        l_scr[...] = jnp.zeros_like(l_scr)
        acc_att[...] = jnp.zeros_like(acc_att)
        acc_res[...] = jnp.zeros_like(acc_res)

    hk = bn_relu(h2k_ref[...]).astype(mm)                       # [tk, Hp]

    # scores  S[q, kv] = (H W_l W_r^T)[q] . H[kv]   (contract hidden dim)
    s = jax.lax.dot_general(hm_scr[...], hk, (((1,), (1,)), ((), ())),
                            preferred_element_type=jnp.float32)  # [tm, tk]

    # online softmax update
    m_new = jnp.maximum(m_scr[...], jnp.max(s, axis=-1, keepdims=True))
    alpha = jnp.exp(m_scr[...] - m_new)
    p = jnp.exp(s - m_new)
    l_scr[...] = alpha * l_scr[...] + jnp.sum(p, axis=-1, keepdims=True)
    acc_att[...] = alpha * acc_att[...] + jnp.dot(
        p.astype(mm), hk, preferred_element_type=jnp.float32)
    m_scr[...] = m_new

    # residual adj @ H fused into the same KV loop (third adj pass)
    acc_res[...] += jnp.dot(adj_ref[...], hk, preferred_element_type=jnp.float32)

    @pl.when(kv == pl.num_programs(1) - 1)
    def _():
        l = l_scr[...]
        inv_l = pl.reciprocal(l, approx=True) if approx_recip else 1.0 / l
        b = (acc_att[...] * inv_l).astype(mm)                    # beta @ H
        o = jnp.dot(b, whg_ref[...], preferred_element_type=jnp.float32)
        out_ref[...] = (acc_res[...] + gamma_ref[0, 0] * o).astype(out_ref.dtype)


def _attention(h2, adj, scale, shift, mlr, whg, gamma, *,
               tm, tk, vmem_limit, approx):
    n, hp = h2.shape
    kernel = functools.partial(_attn_kernel, approx_recip=approx)
    return pl.pallas_call(
        kernel,
        out_shape=jax.ShapeDtypeStruct((n, hp), jnp.float32),
        grid=(n // tm, n // tk),
        in_specs=[
            pl.BlockSpec((tm, hp), lambda q, kv: (q, 0)),      # h2 query rows
            pl.BlockSpec((tk, hp), lambda q, kv: (kv, 0)),     # h2 kv rows
            pl.BlockSpec((tm, tk), lambda q, kv: (q, kv)),     # adj tile (streamed)
            pl.BlockSpec((1, hp), lambda q, kv: (0, 0)),       # BN2 scale
            pl.BlockSpec((1, hp), lambda q, kv: (0, 0)),       # BN2 shift
            pl.BlockSpec((hp, hp), lambda q, kv: (0, 0)),      # W_l W_r^T
            pl.BlockSpec((hp, hp), lambda q, kv: (0, 0)),      # W_h W_g
            pl.BlockSpec(memory_space=pltpu.MemorySpace.SMEM),  # gamma scalar
        ],
        out_specs=pl.BlockSpec((tm, hp), lambda q, kv: (q, 0)),
        scratch_shapes=[
            pltpu.VMEM((tm, hp), h2.dtype),      # H (W_l W_r^T) for this q tile
            pltpu.VMEM((tm, 1), jnp.float32),    # running softmax max
            pltpu.VMEM((tm, 1), jnp.float32),    # running softmax sum
            pltpu.VMEM((tm, hp), jnp.float32),   # softmax-weighted H accumulator
            pltpu.VMEM((tm, hp), jnp.float32),   # residual adj @ H accumulator
        ],
        compiler_params=pltpu.CompilerParams(
            dimension_semantics=("parallel", "arbitrary"),
            vmem_limit_bytes=vmem_limit),
    )(h2, h2, adj, scale, shift, mlr, whg, gamma)


# ---------------------------------------------------------------------------
# wrapper
# ---------------------------------------------------------------------------
def gcn_forward(x, adj, params, *, matmul_dtype=jnp.bfloat16,
                block_rows=256, block_k=512):
    """GCN forward.  Pass `adj` already cast to `matmul_dtype` to avoid a
    per-call N^2 conversion (the cast here only fires if dtypes differ)."""
    n, f = x.shape
    nh = params["w1"].shape[1]
    hp = max(LANES, ((nh + LANES - 1) // LANES) * LANES)   # lane-dense hidden

    tm = _tile(n, block_rows, 8)        # output-row tile
    tk = _tile(n, block_k, LANES)       # contraction / KV tile
    vmem = _vmem_limit_bytes()
    mm = matmul_dtype

    adj_mm = adj if adj.dtype == np.dtype(mm) else adj.astype(mm)
    x_mm = x.astype(mm)

    # zero-padded (lane-dense) weights; padded BN weights are zero so padded
    # lanes stay identically zero through every stage.
    w1 = _pad2(params["w1"], f, hp).astype(mm)
    w2 = _pad2(params["w2"], hp, hp).astype(mm)
    bn1_w = _pad2(params["bn1_w"], 1, hp)
    bn1_b = _pad2(params["bn1_b"], 1, hp)
    bn2_w = _pad2(params["bn2_w"], 1, hp)
    bn2_b = _pad2(params["bn2_b"], 1, hp)
    # tiny attention-weight folds:  S = H (W_l W_r^T) H^T,  O = B (W_h W_g)
    m_lr = _pad2(params["wl"] @ params["wr"].T, hp, hp).astype(mm)
    w_hg = _pad2(params["wh"] @ params["wg"], hp, hp).astype(mm)

    ones = jnp.ones((1, hp), jnp.float32)
    zeros = jnp.zeros((1, hp), jnp.float32)

    # ---- gc1 : h1 = adj @ (x @ W1)  + partial BN1 stats ----
    h1, st1 = _gc_layer(x_mm, adj_mm, w1, ones, zeros,
                        tm=tm, tk=tk, fuse_bn=False, vmem_limit=vmem)
    sc1, sh1 = _bn_fold(st1, bn1_w, bn1_b, n, hp)

    # ---- gc2 : h2 = adj @ (bn_relu(h1) @ W2)  + partial BN2 stats ----
    h2, st2 = _gc_layer(h1, adj_mm, w2, sc1, sh1,
                        tm=tm, tk=tk, fuse_bn=True, vmem_limit=vmem)
    sc2, sh2 = _bn_fold(st2, bn2_w, bn2_b, n, hp)

    # ---- attention (online softmax) + residual adj @ bn_relu(h2) ----
    out = _attention(h2, adj_mm, sc2, sh2, m_lr, w_hg, params["gamma"],
                     tm=tm, tk=tk, vmem_limit=vmem,
                     approx=(np.dtype(mm) != np.dtype(jnp.float32)))
    return out[:, :nh]


# ---------------------------------------------------------------------------
# reference / params / test
# ---------------------------------------------------------------------------
def _reference(x, adj, p):
    """Faithful f32 re-implementation of the PyTorch module forward."""
    def bn_relu(h, w, b):
        m = jnp.mean(h, axis=0, keepdims=True)
        v = jnp.mean((h - m) ** 2, axis=0, keepdims=True)
        return jnp.maximum((h - m) / jnp.sqrt(v + EPS) * w + b, 0.0)

    h = adj @ (x @ p["w1"])
    h = bn_relu(h, p["bn1_w"], p["bn1_b"])
    h = adj @ (h @ p["w2"])
    h = bn_relu(h, p["bn2_w"], p["bn2_b"])
    s = (h @ p["wl"]) @ (h @ p["wr"]).T
    beta = jax.nn.softmax(s, axis=-1)
    o = ((beta @ h) @ p["wh"]) @ p["wg"]
    return adj @ h + p["gamma"][0, 0] * o


def init_params(key, nfeat, nhid):
    ks = jax.random.split(key, 6)
    stdv = 1.0 / (nhid ** 0.5)

    def xavier(k, fan_in, fan_out):
        bound = (6.0 / (fan_in + fan_out)) ** 0.5
        return jax.random.uniform(k, (fan_in, fan_out), jnp.float32, -bound, bound)

    return {
        "w1": jax.random.uniform(ks[0], (nfeat, nhid), jnp.float32, -stdv, stdv),
        "w2": jax.random.uniform(ks[1], (nhid, nhid), jnp.float32, -stdv, stdv),
        "bn1_w": jnp.ones((1, nhid), jnp.float32),
        "bn1_b": jnp.zeros((1, nhid), jnp.float32),
        "bn2_w": jnp.ones((1, nhid), jnp.float32),
        "bn2_b": jnp.zeros((1, nhid), jnp.float32),
        "wl": xavier(ks[2], nhid, nhid),
        "wr": xavier(ks[3], nhid, nhid),
        "wh": xavier(ks[4], nhid, nhid),
        "wg": xavier(ks[5], nhid, nhid),
        "gamma": jnp.zeros((1, 1), jnp.float32),  # nn.Parameter([0])
    }


if __name__ == "__main__":
    # N chosen so the grids are non-trivial (4 row tiles x 2 K/KV tiles): the
    # accumulator init/finalize and the online softmax actually iterate.
    N, NFEAT, NHID = 256, 32, 32
    key = jax.random.PRNGKey(0)
    kx, ka, kp = jax.random.split(key, 3)

    x = jax.random.normal(kx, (N, NFEAT), jnp.float32)
    # symmetric-ish normalized adjacency (deterministic, synthetic)
    a = (jax.random.uniform(ka, (N, N)) > 0.9).astype(jnp.float32)
    adj = a + a.T + jnp.eye(N, dtype=jnp.float32)
    adj = adj / jnp.sum(adj, axis=1, keepdims=True)

    params = init_params(kp, NFEAT, NHID)
    # Nonzero gamma so the attention branch contributes (PyTorch inits it to 0;
    # forward semantics are identical).
    params["gamma"] = jnp.full((1, 1), 0.25, jnp.float32)

    ref = _reference(x, adj, params)

    # Exact-precision path validates the tiled math (multi-tile accumulators,
    # online softmax, BN-stat folds); exact reciprocal on this path.
    out_f32 = gcn_forward(x, adj, params, matmul_dtype=jnp.float32,
                          block_rows=64, block_k=128)
    jax.block_until_ready(out_f32)
    assert jnp.allclose(out_f32, ref, atol=5e-3, rtol=5e-3), "f32 kernel mismatch"

    # Fast path: bf16 MXU operands, f32 accumulation / BN stats / softmax.
    adj_bf16 = adj.astype(jnp.bfloat16)      # hoisted one-time adjacency cast
    out = gcn_forward(x, adj_bf16, params, block_rows=64, block_k=128)
    jax.block_until_ready(out)
    assert jnp.allclose(out, ref, atol=1e-1, rtol=1e-1), "bf16 kernel mismatch"

    print("KERNEL_OK")
</pallas_src>

<mosaic_0001>
module attributes {stable_mosaic.version = 11 : i64} {
  func.func @_gc_kernel(%arg0: i32, %arg1: i32, %arg2: memref<128x32xf32, #tpu.memory_space<vmem>>, %arg3: memref<64x128xf32, #tpu.memory_space<vmem>>, %arg4: memref<32x128xf32, #tpu.memory_space<vmem>>, %arg5: memref<1x128xf32, #tpu.memory_space<vmem>>, %arg6: memref<1x128xf32, #tpu.memory_space<vmem>>, %arg7: memref<64x128xf32, #tpu.memory_space<vmem>>, %arg8: memref<8x128xf32, #tpu.memory_space<vmem>>, %arg9: memref<64x128xf32, #tpu.memory_space<vmem>>) attributes {dimension_semantics = [#tpu.dimension_semantics<parallel>, #tpu.dimension_semantics<arbitrary>], iteration_bounds = array<i64: 4, 2>, scalar_prefetch = 0 : i64, scratch_operands = 1 : i64, tpu.core_type = #tpu.core_type<tc>, window_params = [{transform_indices = @transform_0, window_bounds = array<i64: 128, 32>}, {transform_indices = @transform_1, window_bounds = array<i64: 64, 128>}, {pipeline_mode = #tpu.pipeline_mode<synchronous>, transform_indices = @transform_2, window_bounds = array<i64: 32, 128>}, {pipeline_mode = #tpu.pipeline_mode<synchronous>, transform_indices = @transform_3, window_bounds = array<i64: 1, 128>}, {pipeline_mode = #tpu.pipeline_mode<synchronous>, transform_indices = @transform_4, window_bounds = array<i64: 1, 128>}, {transform_indices = @transform_5, window_bounds = array<i64: 64, 128>}, {transform_indices = @transform_6, window_bounds = array<i64: 8, 128>}]} {
    %c0_i32 = arith.constant 0 : i32
    %0 = arith.cmpi eq, %arg1, %c0_i32 : i32
    %1 = arith.extui %0 : i1 to i32
    %c0_i32_0 = arith.constant 0 : i32
    %2 = arith.cmpi ne, %1, %c0_i32_0 : i32
    scf.if %2 {
      %cst_12 = arith.constant 0.000000e+00 : f32
      %14 = vector.broadcast %cst_12 : f32 to vector<64x128xf32>
      %c0_13 = arith.constant 0 : index
      %c0_14 = arith.constant 0 : index
      %15 = vector.load %arg9[%c0_13, %c0_14] : memref<64x128xf32, #tpu.memory_space<vmem>>, vector<64x128xf32>
      tpu.vector_store %arg9[%c0_13, %c0_14], %14 {strides = array<i32>} : memref<64x128xf32, #tpu.memory_space<vmem>>, vector<64x128xf32>,
    } else {
    }
    %c0 = arith.constant 0 : index
    %c0_1 = arith.constant 0 : index
    %3 = vector.load %arg2[%c0, %c0_1] : memref<128x32xf32, #tpu.memory_space<vmem>>, vector<128x32xf32>
    %c0_2 = arith.constant 0 : index
    %c0_3 = arith.constant 0 : index
    %4 = vector.load %arg4[%c0_2, %c0_3] : memref<32x128xf32, #tpu.memory_space<vmem>>, vector<32x128xf32>
    %cst = arith.constant dense<0.000000e+00> : vector<128x128xf32>
    %5 = tpu.matmul %3, %4, %cst {dimension_numbers = #tpu.dot_dimension_numbers<[1], [0], [0], [1], [0, 0, 1, 1], [], []>} : vector<128x32xf32>, vector<32x128xf32>, vector<128x128xf32> -> vector<128x128xf32>
    %c0_4 = arith.constant 0 : index
    %c0_5 = arith.constant 0 : index
    %6 = vector.load %arg9[%c0_4, %c0_5] : memref<64x128xf32, #tpu.memory_space<vmem>>, vector<64x128xf32>
    %c0_6 = arith.constant 0 : index
    %c0_7 = arith.constant 0 : index
    %7 = vector.load %arg3[%c0_6, %c0_7] : memref<64x128xf32, #tpu.memory_space<vmem>>, vector<64x128xf32>
    %cst_8 = arith.constant dense<0.000000e+00> : vector<64x128xf32>
    %8 = tpu.matmul %7, %5, %cst_8 {dimension_numbers = #tpu.dot_dimension_numbers<[1], [0], [0], [1], [0, 0, 1, 1], [], []>} : vector<64x128xf32>, vector<128x128xf32>, vector<64x128xf32> -> vector<64x128xf32>
    %9 = arith.addf %6, %8 : vector<64x128xf32>
    %c0_9 = arith.constant 0 : index
    %c0_10 = arith.constant 0 : index
    %10 = vector.load %arg9[%c0_9, %c0_10] : memref<64x128xf32, #tpu.memory_space<vmem>>, vector<64x128xf32>
    tpu.vector_store %arg9[%c0_9, %c0_10], %9 {strides = array<i32>} : memref<64x128xf32, #tpu.memory_space<vmem>>, vector<64x128xf32>,
    %c1_i32 = arith.constant 1 : i32
    %11 = arith.cmpi eq, %arg1, %c1_i32 : i32
    %12 = arith.extui %11 : i1 to i32
    %c0_i32_11 = arith.constant 0 : i32
    %13 = arith.cmpi ne, %12, %c0_i32_11 : i32
    scf.if %13 {
      %c0_12 = arith.constant 0 : index
      %c0_13 = arith.constant 0 : index
      %14 = vector.load %arg9[%c0_12, %c0_13] : memref<64x128xf32, #tpu.memory_space<vmem>>, vector<64x128xf32>
      %c0_14 = arith.constant 0 : index
      %c0_15 = arith.constant 0 : index
      %15 = vector.load %arg7[%c0_14, %c0_15] : memref<64x128xf32, #tpu.memory_space<vmem>>, vector<64x128xf32>
      tpu.vector_store %arg7[%c0_14, %c0_15], %14 {strides = array<i32>} : memref<64x128xf32, #tpu.memory_space<vmem>>, vector<64x128xf32>,
      %cst_16 = arith.constant dense<0.000000e+00> : vector<128xf32>
      %16 = vector.multi_reduction <add>, %14, %cst_16 [0] : vector<64x128xf32> to vector<128xf32>
      %17 = vector.shape_cast %16 : vector<128xf32> to vector<1x128xf32>
      %18 = arith.mulf %14, %14 : vector<64x128xf32>
      %cst_17 = arith.constant dense<0.000000e+00> : vector<128xf32>
      %19 = vector.multi_reduction <add>, %18, %cst_17 [0] : vector<64x128xf32> to vector<128xf32>
      %20 = vector.shape_cast %19 : vector<128xf32> to vector<1x128xf32>
      %cst_18 = arith.constant 0.000000e+00 : f32
      %21 = vector.broadcast %cst_18 : f32 to vector<6x128xf32>
      %22 = tpu.concatenate %17, %20, %21 in 0 : vector<1x128xf32>, vector<1x128xf32>, vector<6x128xf32> -> vector<8x128xf32>
      %c0_19 = arith.constant 0 : index
      %c0_20 = arith.constant 0 : index
      %23 = vector.load %arg8[%c0_19, %c0_20] : memref<8x128xf32, #tpu.memory_space<vmem>>, vector<8x128xf32>
      tpu.vector_store %arg8[%c0_19, %c0_20], %22 {strides = array<i32>} : memref<8x128xf32, #tpu.memory_space<vmem>>, vector<8x128xf32>,
    } else {
    }
    return
  }
  func.func @transform_0(%arg0: i32, %arg1: i32) -> (i32, i32) {
    %c0_i32 = arith.constant 0 : i32
    %c0_i32_0 = arith.constant 0 : i32
    return %arg1, %c0_i32 : i32, i32
  }
  func.func @transform_1(%arg0: i32, %arg1: i32) -> (i32, i32) {
    %c0_i32 = arith.constant 0 : i32
    return %arg0, %arg1 : i32, i32
  }
  func.func @transform_2(%arg0: i32, %arg1: i32) -> (i32, i32) {
    %c0_i32 = arith.constant 0 : i32
    %c0_i32_0 = arith.constant 0 : i32
    %c0_i32_1 = arith.constant 0 : i32
    return %c0_i32, %c0_i32_0 : i32, i32
  }
  func.func @transform_3(%arg0: i32, %arg1: i32) -> (i32, i32) {
    %c0_i32 = arith.constant 0 : i32
    %c0_i32_0 = arith.constant 0 : i32
    %c0_i32_1 = arith.constant 0 : i32
    return %c0_i32, %c0_i32_0 : i32, i32
  }
  func.func @transform_4(%arg0: i32, %arg1: i32) -> (i32, i32) {
    %c0_i32 = arith.constant 0 : i32
    %c0_i32_0 = arith.constant 0 : i32
    %c0_i32_1 = arith.constant 0 : i32
    return %c0_i32, %c0_i32_0 : i32, i32
  }
  func.func @transform_5(%arg0: i32, %arg1: i32) -> (i32, i32) {
    %c0_i32 = arith.constant 0 : i32
    %c0_i32_0 = arith.constant 0 : i32
    return %arg0, %c0_i32 : i32, i32
  }
  func.func @transform_6(%arg0: i32, %arg1: i32) -> (i32, i32) {
    %c0_i32 = arith.constant 0 : i32
    %c0_i32_0 = arith.constant 0 : i32
    return %arg0, %c0_i32 : i32, i32
  }
}

</mosaic_0001>

<bundles_post_ra>
// kernel: tpu_custom_call.1
= control target key start
LH: loop header
LB: loop body
LE: loop exit
PB: predicated region body
PF: predicated region fallthrough
CT: control target
= control target key end

     0   :  { %s1790_s0 = inlined_call_operand.vmem [shape: f32[256,32], index: 0, kind: input, shape index: {}]   ;;  %s1791_s1 = inlined_call_operand.hbm [shape: f32[256,256], index: 1, kind: input, shape index: {}]   ;;  %s1792_s2 = inlined_call_operand.vmem [shape: f32[32,128], index: 2, kind: input, shape index: {}]   ;;  %s1793_s3 = inlined_call_operand.vmem [shape: f32[1,128], index: 3, kind: input, shape index: {}]   ;;  %s1794_s4 = inlined_call_operand.vmem [shape: f32[1,128], index: 4, kind: input, shape index: {}]   ;;  %s1795_s5 = inlined_call_operand.hbm [shape: f32[256,128], index: 5, kind: output, shape index: {0}]   ;;  %s1796_s6 = inlined_call_operand.hbm [shape: f32[32,128], index: 6, kind: output, shape index: {1}]  }
   0x1   :  { %1800 = sst [smem:[#allocation15_spill]] %s1790_s0 }
   0x2   :  { %1801 = sst [smem:[#allocation16_spill]] %s1791_s1 }
   0x3   :  { %1802 = sst [smem:[#allocation17_spill]] %s1792_s2 }
   0x4   :  { %12 = vsyncpa [#allocation4], 0 }
   0x5   :  { %14 = vsyncpa [#allocation4 + $0x1], 0 }
   0x6   :  { %15 = vsyncpa [#allocation5], 0 }
   0x7   :  { %17 = vsyncpa [#allocation5 + $0x1], 0 }
   0x8   :  { %18 = vsyncpa [#allocation8], 0 }
   0x9   :  { %20 = vsyncpa [#allocation8 + $0x1], 0  ;;  %s1465_s21 = smov 0   ;;  %s1467_s22 = smov 0  }
   0xa   :  { %s1469_s3 = smov 0   ;;  %s1471_s23 = smov 0  }
   0xb   :  { %s1473_s4 = smov 0   ;;  %s1475_s24 = smov 0  }
   0xc   :  { %s1477_s25 = smov 0   ;;  %s1479_s26 = smov 0  }
   0xd   :  { %s1481_s27 = smov 0   ;;  %s1483_s28 = smov 0  }
   0xe   :  { %s1485_s29 = smov 0  }
   0xf LB: > { %s905_s30 = sadd.s32 4294967295, %s1419_s29   ;;  %s906_s7 = sadd.s32 4294967294, %s1419_s29   ;;  %s1419_s29 = sphi %s1485_s29, %s26_s29   ;;  %s1415_s28 = sphi %s1483_s28, %s1828_s28   ;;  %s1411_s27 = sphi %s1481_s27, %s1827_s27   ;;  %s1407_s26 = sphi %s1479_s26, %s1826_s26   ;;  %s1403_s25 = sphi %s1477_s25, %s1825_s25   ;;  %s1399_s24 = sphi %s1475_s24, %s1824_s24   ;;  %s1395_s4 = sphi %s1473_s4, %s1823_s4   ;;  %s1391_s23 = sphi %s1471_s23, %s1822_s23   ;;  %s1387_s3 = sphi %s1469_s3, %s1821_s3   ;;  %s1383_s22 = sphi %s1467_s22, %s1820_s22   ;;  %s1379_s21 = sphi %s1465_s21, %s1819_s21  }
  0x10   : > { %s35_s8 = sadd.s32 1, %s1411_s27  ;;  %s38_s9 = sadd.s32 1, %s1415_s28 }
  0x11   : > { %p36_p0 = scmp.ge.s32.totalorder %s35_s8, 2  ;;  %s73_s10 = sadd.s32 1, %s1399_s24 }
  0x12   : > { %p80_p1 = scmp.ne.s32.totalorder %s1399_s24, %s1395_s4  ;;  %p81_p2 = scmp.eq.s32.totalorder %s1419_s29, 0 }
  0x13   : > { %s1830_s8 = smov (%p36_p0, %s35_s8), 0  ;;  %s1832_s9 = smov (!%p36_p0, %s38_s9), %s1415_s28 }
  0x14   : > { %1803 = sst [smem:[#allocation12_spill]] %s1830_s8  ;;  %s69_s11 = ssub.s32 %s1411_s27, %s1830_s8 }
  0x15   : > { %p1531_p3 = por %p81_p2, %p80_p1  ;;  %p40_p4 = scmp.ge.s32.totalorder %s1832_s9, 4 }
  0x16   : > { %p86_p5 = scmp.ne.s32.totalorder %s1395_s4, %s1391_s23  ;;  %p87_p6 = scmp.eq.s32.totalorder %s905_s30, 0 }
  0x17   : > { %s162_s13 = sadd.s32 1, %s1387_s3  ;;  %s1834_s9 = smov (%p40_p4, %s1832_s9), 0 }
  0x18   : > { %1805 = sst [smem:[#allocation13_spill]] %s1834_s9  ;;  %p1539_p7 = por %p87_p6, %p86_p5 }
  0x19   : > { %p172_p8 = scmp.ne.s32.totalorder %s1387_s3, %s1383_s22  ;;  %s68_s15 = ssub.s32 %s1415_s28, %s1834_s9 }
  0x1a   : > { %p173_p9 = scmp.eq.s32.totalorder %s905_s30, 7  ;;  %s70_s16 = sor.u32 %s69_s11, %s68_s15 }
  0x1b   : > { %p160_p10 = scmp.eq.s32.totalorder %s68_s15, 0  ;;  %p71_p11 = scmp.eq.s32.totalorder %s70_s16, 0 }
  0x1c   : > { %p1547_p12 = por %p173_p9, %p172_p8  ;;  %p178_p13 = scmp.ne.s32.totalorder %s1383_s22, %s1379_s21 }
  0x1d   : > { %s1552_s18 = scalar_select %p160_p10, %s1387_s3, %s162_s13  }
  0x1e   : > { %s1807_s17 = scalar_select %p1547_p12, 1, 0 }
  0x1f   : > { %1808 = sst [smem:[#allocation14_spill]] %s1552_s18  ;;  %p179_p0 = scmp.eq.s32.totalorder %s906_s7, 7 }
  0x20   : > { %s1555_s19 = scalar_select %p71_p11, %s1399_s24, %s73_s10  }
  0x21   : > { %p1139_p1 = scmp.lt.s32.totalorder %s1419_s29, 8  ;;  %p1560_p2 = por %p179_p0, %p178_p13 }
  0x22   : > { %s243_s23 = sand.u32 1, %s1399_s24   ;;  %s944_s11 = sshll.u32 %s1415_s28, 4 }
  0x23   : > { %s1809_s20 = scalar_select %p1560_p2, 1, 0 }
  0x24   : > { %s909_s30 = sshll.u32 %s243_s23, 6  ;;  %s253_s15 = sadd.s32 %s1411_s27, %s944_s11 }
  0x25   : > { %s247_s16 = scalar_lea.vmem [#allocation3], %s909_s30  ;;  %s912_s8 = sshll.u32 %s253_s15, 7 }
  0x26   : > { %s256_s9 = sshll.u32 %s247_s16, 4  ;;  %s1810_s1 = sld [smem:[#allocation16_spill]]  ;;  %s1567_s9 = int_to_ptr.vmem [resolvable:$true] %s256_s9 }
  0x27   : > { %p1576_p4 = pnand %p1139_p1, %p1531_p3  ;;  %s1580_s30 = scalar_lea.sflag [#allocation4], %s243_s23 }
  0x29   : > { %p1237_p6 = pneg %p1576_p4 }
  0x2c   : > { %s1572_s10 = scalar_lea.hbm %s1810_s1, %s912_s8  ;;  %s1240_s18 = scalar_lea.hbm %s1810_s1, 8192 }
  0x2d   : > { %s1235_s11 = scalar_lea.hbm %s1572_s10, 1024  ;;  %p1241_p3 = scmp.lt.u32.totalorder %s1572_s10, %s1810_s1 }
  0x2e   : > { %p1236_p5 = scmp.ne.s32.totalorder %s1572_s10, %s1235_s11  ;;  %p1242_p10 = scmp.lt.u32.totalorder %s1240_s18, %s1235_s11 }
  0x2f   : > { %p1244_p13 = scmp.lt.u32.totalorder %s1235_s11, %s1572_s10 }
  0x30   : > { %p1238_p8 = pnand %p1237_p6, %p1236_p5  ;;  %p1243_p11 = por %p1242_p10, %p1241_p3 }
  0x32   : > { %p1239_p9 = pneg %p1238_p8  ;;  %p1245_p0 = por %p1244_p13, %p1243_p11 }
  0x34   : > { %p1246_p1 = pnand %p1245_p0, %p1239_p9 }
  0x36   : > { %1249 = shalt.err (!%p1246_p1)
}
  0x37   : > { %s1250_s23 = scalar_lea.vmem %s1567_s9, 1024  ;;  %s1421_s13 = smov [#allocation3]  }
  0x38   : > { %p1251_p5 = scmp.ne.s32.totalorder %s1567_s9, %s1250_s23  ;;  %s1255_s8 = sshll.u32 %s1421_s13, 4  ;;  %s1256_s8 = int_to_ptr.vmem [resolvable:$false] %s1255_s8 }
  0x39   : > { %s1257_s12 = scalar_lea.vmem %s1256_s8, 2048  ;;  %p1258_p12 = scmp.lt.s32.totalorder %s1567_s9, %s1256_s8 }
  0x3a   : > { %p1253_p8 = pnand %p1251_p5, %p1237_p6  ;;  %p1259_p3 = scmp.lt.s32.totalorder %s1257_s12, %s1250_s23 }
  0x3c   : > { %p1254_p2 = pneg %p1253_p8  ;;  %p1260_p10 = por %p1259_p3, %p1258_p12 }
  0x3e   : > { %p1261_p11 = pnand %p1260_p10, %p1254_p2 }
  0x40   : > { %1264 = shalt.err (!%p1261_p11)
}
  0x41   : > { %s1422_s11 = smov 256   ;;  %s1423_s18 = smov 128  }
  0x42   : > { %s1424_s15 = smov 8   ;;  %p913_p6 = scmp.ge.s32.totalorder %s1419_s29, 1 }
  0x43   : > { %1131 = dma.hbm_to_vmem [thread:$0]  (!%p1576_p4), %s1572_s10, 1024, %s1567_s9, %s1580_s30, %s1422_s11, %s1423_s18, %s1424_s15  }
  0x44   : > { %p264_p9 = scmp.lt.s32.totalorder %s1419_s29, 9 }
  0x46   : > { %p265_p13 = pnand %p913_p6, %p264_p9 }
  0x47   : > { %s270_s16 = sand.u32 (!%p265_p13), 1, %s1395_s4  }
  0x48   : > { %268 = sbr.rel (%p265_p13) target bundleno = 661 (0x295), region = 40  ;;  %s914_s23 = sshll.u32 (!%p265_p13), %s270_s16, 6 }
  0x49   : > { %s271_s13 = scalar_lea.sflag (!%p265_p13), [#allocation4], %s270_s16  ;;  %s1611_s8 = scalar_lea.vmem (!%p265_p13), [#allocation3], %s914_s23 }
  0x4f   : > { %1366 = dma.done.wait (%p1539_p7), %s271_s13, 1024  }
  0x50   : > { %1368 = vsyncadd (%p1539_p7), %s271_s13, 4294966272  ;;  %s1618_s7 = sand.u32 1, %s1383_s22   ;;  %s917_s9 = sshll.u32 %s1403_s25, 4 }
  0x51   : > { %s915_s10 = sshll.u32 %s1618_s7, 6  ;;  %s916_s30 = sshll.u32 %s1618_s7, 3 }
  0x52   : > { %p314_p12 = scmp.lt.s32.totalorder %s917_s9, 31  ;;  %s1812_s0 = sld [smem:[#allocation15_spill]] }
  0x53   : > { %s1628_s16 = scalar_lea.vmem [#allocation6], %s915_s10  ;;  %s1630_s14 = scalar_lea.vmem [#allocation7], %s916_s30 }
  0x54   : > { %s1836_s9 = smov (!%p314_p12, %s917_s9), 31  ;;  %p919_p7 = scmp.ne.s32.totalorder %s1403_s25, 0 }
  0x55   : > { %s918_s12 = sshll.u32 %s1836_s9, 3  ;;  %v1425_v0 = vmov (!%p919_p7), 0.0  }
  0x56   : > { %324 = sbr.rel (%p919_p7) target bundleno = 93 (0x5d), region = 48  ;;  %325 = vst [vmem:[#allocation2] sm:$0xff] (!%p919_p7), %v1425_v0  ;;  %326 = vst [vmem:[#allocation2 + $0x8] sm:$0xff] (!%p919_p7), %v1425_v0 }
  0x57   : > { %327 = vst [vmem:[#allocation2 + $0x10] sm:$0xff] (!%p919_p7), %v1425_v0  ;;  %328 = vst [vmem:[#allocation2 + $0x18] sm:$0xff] (!%p919_p7), %v1425_v0 }
  0x58   : > { %s1626_s15 = scalar_lea.vmem %s1812_s0, %s918_s12  ;;  %329 = vst [vmem:[#allocation2 + $0x20] sm:$0xff] (!%p919_p7), %v1425_v0  ;;  %330 = vst [vmem:[#allocation2 + $0x28] sm:$0xff] (!%p919_p7), %v1425_v0 }
  0x59   : > { %331 = vst [vmem:[#allocation2 + $0x30] sm:$0xff] (!%p919_p7), %v1425_v0  ;;  %332 = vst [vmem:[#allocation2 + $0x38] sm:$0xff] (!%p919_p7), %v1425_v0 }
  0x5d PF: > { %s1813_s2 = sld [smem:[#allocation17_spill]]  ;;  %vm353_vm0 = vcmask 261120   ;;  %v333_v6 = vld [vmem:[%s1626_s15] sm:$0xff]  ;;  %v334_v8 = vld [vmem:[%s1626_s15 + $0x8] sm:$0xff]  ;;  %v335_v9 = vld [vmem:[%s1626_s15 + $0x10] sm:$0xff]  ;;  %p936_p2 = scmp.ne.s32.totalorder %s1403_s25, 1 }
  0x5e   : > { %998 = vmatprep.mubr.msk.f32.mxu0 %vm353_vm0, %v333_v6  ;;  %v336_v10 = vld [vmem:[%s1626_s15 + $0x18] sm:$0xff]  ;;  %v337_v11 = vld [vmem:[%s1626_s15 + $0x20] sm:$0xff]  ;;  %v338_v12 = vld [vmem:[%s1626_s15 + $0x28] sm:$0xff]  ;;  %vm738_vm1 = vcmask (!%p936_p2), 1040384   ;;  %vm740_vm2 = vcmask (!%p936_p2), 1041408  }
  0x5f   : > { %v339_v13 = vld [vmem:[%s1626_s15 + $0x30] sm:$0xff]  ;;  %v340_v14 = vld [vmem:[%s1626_s15 + $0x38] sm:$0xff]  ;;  %v341_v15 = vld [vmem:[%s1626_s15 + $0x40] sm:$0xff] }
  0x60   : > { %v342_v16 = vld [vmem:[%s1626_s15 + $0x48] sm:$0xff]  ;;  %v343_v17 = vld [vmem:[%s1626_s15 + $0x50] sm:$0xff]  ;;  %v344_v18 = vld [vmem:[%s1626_s15 + $0x58] sm:$0xff] }
  0x61   : > { %v345_v19 = vld [vmem:[%s1626_s15 + $0x60] sm:$0xff]  ;;  %v346_v20 = vld [vmem:[%s1626_s15 + $0x68] sm:$0xff]  ;;  %v347_v21 = vld [vmem:[%s1626_s15 + $0x70] sm:$0xff] }
  0x62   : > { %v348_v22 = vld [vmem:[%s1626_s15 + $0x78] sm:$0xff]  ;;  %v557_v23 = vld [vmem:[%s1611_s8 + $0x10] sm:$0xff]  ;;  %v555_v24 = vld [vmem:[%s1611_s8] sm:$0xff] }
  0x63   : > { %v349_v1 = vld [vmem:[%s1813_s2] sm:$0xff]  ;;  %v350_v2 = vld [vmem:[%s1813_s2 + $0x8] sm:$0xff]  ;;  %v351_v3 = vld [vmem:[%s1813_s2 + $0x10] sm:$0xff]  ;;  %1057 = vmatprep.mubr.f32.mxu1 %v557_v23 }
  0x64   : > { %v1066_v4 = vpack.c.bf16 %v350_v2, %v349_v1  ;;  %v352_v5 = vld [vmem:[%s1813_s2 + $0x18] sm:$0xff]  ;;  %v556_v50 = vld [vmem:[%s1611_s8 + $0x8] sm:$0xff]  ;;  %v559_v51 = vld [vmem:[%s1611_s8 + $0x20] sm:$0xff] }
  0x65   : > { %v1070_v7 = vpack.c.bf16 %v352_v5, %v351_v3  ;;  %v558_v49 = vld [vmem:[%s1611_s8 + $0x18] sm:$0xff]  ;;  %v560_v52 = vld [vmem:[%s1611_s8 + $0x28] sm:$0xff]  ;;  %v561_v53 = vld [vmem:[%s1611_s8 + $0x30] sm:$0xff] }
  0x66   : > { %1067 = vmatprep.subr.bf16.mxu0 %v1066_v4  ;;  %v562_v54 = vld [vmem:[%s1611_s8 + $0x38] sm:$0xff]  ;;  %v548_v56 = vld [vmem:[#allocation2 + $0x8] sm:$0xff]  ;;  %v549_v57 = vld [vmem:[#allocation2 + $0x10] sm:$0xff] }
  0x67   : > { %1069 = vmatpush3.bf16.msra.mxu0 %v1066_v4  ;;  %v550_v55 = vld [vmem:[#allocation2 + $0x18] sm:$0xff]  ;;  %v547_v58 = vld [vmem:[#allocation2] sm:$0xff]  ;;  %v552_v2 = vld [vmem:[#allocation2 + $0x28] sm:$0xff] }
  0x68   : > { %1071 = vmatprep.subr.bf16.mxu0 %v1070_v7  ;;  %v551_v4 = vld [vmem:[#allocation2 + $0x20] sm:$0xff] }
  0x6b   : > { %1073 = vmatpush3.bf16.msra.mxu0 %v1070_v7 }
  0x6e   : > { %999 = vmatmul.mubr.msk.f32.vlgmr.msra.gmra.mrb[0].mxu0 %vm353_vm0, %v334_v8 }
  0x6f   : > { %1001 = vmatprep.mubr.msk.f32.mxu0 %vm353_vm0, %v335_v9  ;;  %v554_v9 = vld [vmem:[#allocation2 + $0x38] sm:$0xff] }
  0x72   : > { %1002 = vmatmul.mubr.msk.f32.gmra.mrb[2].mxu0 %vm353_vm0, %v336_v10  ;;  %v553_v10 = vld [vmem:[#allocation2 + $0x30] sm:$0xff] }
  0x73   : > { %1004 = vmatprep.mubr.msk.f32.mxu0 %vm353_vm0, %v337_v11 }
  0x76   : > { %1005 = vmatmul.mubr.msk.f32.gmra.mrb[4].mxu0 %vm353_vm0, %v338_v12 }
  0x77   : > { %1007 = vmatprep.mubr.msk.f32.mxu0 %vm353_vm0, %v339_v13 }
  0x7a   : > { %1008 = vmatmul.mubr.msk.f32.gmra.mrb[6].mxu0 %vm353_vm0, %v340_v14 }
  0x7b   : > { %1010 = vmatprep.mubr.msk.f32.mxu0 %vm353_vm0, %v341_v15 }
  0x7e   : > { %1011 = vmatmul.mubr.msk.f32.gmra.mrb[8].mxu0 %vm353_vm0, %v342_v16 }
  0x7f   : > { %1013 = vmatprep.mubr.msk.f32.mxu0 %vm353_vm0, %v343_v17 }
  0x82   : > { %1014 = vmatmul.mubr.msk.f32.gmra.mrb[10].mxu0 %vm353_vm0, %v344_v18 }
  0x83   : > { %1016 = vmatprep.mubr.msk.f32.mxu0 %vm353_vm0, %v345_v19 }
  0x86   : > { %1017 = vmatmul.mubr.msk.f32.gmra.mrb[12].mxu0 %vm353_vm0, %v346_v20 }
  0x87   : > { %1019 = vmatprep.mubr.msk.f32.mxu0 %vm353_vm0, %v347_v21 }
  0x8a   : > { %1020 = vmatmul.mubr.msk.f32.gmra.mrb[14].mxu0 %vm353_vm0, %v348_v22 }
  0x8b   : > { %1054 = vmatprep.mubr.f32.mxu0 %v555_v24 }
 0x141   : > { %v1000_v25 = vpop.f32.mrb[0].mxu0 }
 0x142   : > { %v468_v26 = vpop.f32.mrb[1].mxu0 }
 0x143   : > { %v1074_v27 = vpack.c.bf16 %v1000_v25, %v468_v26 }
 0x145   : > { %v1003_v28 = vpop.f32.mrb[2].mxu0  ;;  %1075 = vmatprep.subr.bf16.mxu0 %v1074_v27  ;;  %1106 = vmatprep.subr.bf16.mxu1 %v1074_v27 }
 0x146   : > { %v478_v29 = vpop.f32.mrb[3].mxu0  ;;  %1077 = vmatpush3.bf16.msra.mxu0 %v1074_v27  ;;  %1114 = vmatpush3.bf16.msra.mxu1 %v1074_v27 }
 0x147   : > { %v1078_v30 = vpack.c.bf16 %v1003_v28, %v478_v29 }
 0x149   : > { %v1006_v31 = vpop.f32.mrb[4].mxu0  ;;  %1079 = vmatprep.subr.bf16.mxu0 %v1078_v30  ;;  %1107 = vmatprep.subr.bf16.mxu1 %v1078_v30 }
 0x14a   : > { %v488_v32 = vpop.f32.mrb[5].mxu0  ;;  %1081 = vmatpush3.bf16.msra.mxu0 %v1078_v30  ;;  %1115 = vmatpush3.bf16.msra.mxu1 %v1078_v30 }
 0x14b   : > { %v1082_v33 = vpack.c.bf16 %v1006_v31, %v488_v32 }
 0x14d   : > { %v1009_v34 = vpop.f32.mrb[6].mxu0  ;;  %1083 = vmatprep.subr.bf16.mxu0 %v1082_v33  ;;  %1108 = vmatprep.subr.bf16.mxu1 %v1082_v33 }
 0x14e   : > { %v498_v35 = vpop.f32.mrb[7].mxu0  ;;  %1085 = vmatpush3.bf16.msra.mxu0 %v1082_v33  ;;  %1116 = vmatpush3.bf16.msra.mxu1 %v1082_v33 }
 0x14f   : > { %v1086_v36 = vpack.c.bf16 %v1009_v34, %v498_v35 }
 0x151   : > { %v1012_v37 = vpop.f32.mrb[8].mxu0  ;;  %1087 = vmatprep.subr.bf16.mxu0 %v1086_v36  ;;  %1109 = vmatprep.subr.bf16.mxu1 %v1086_v36 }
 0x152   : > { %v508_v38 = vpop.f32.mrb[9].mxu0  ;;  %1089 = vmatpush3.bf16.msra.mxu0 %v1086_v36  ;;  %1117 = vmatpush3.bf16.msra.mxu1 %v1086_v36 }
 0x153   : > { %v1090_v39 = vpack.c.bf16 %v1012_v37, %v508_v38 }
 0x155   : > { %v1015_v40 = vpop.f32.mrb[10].mxu0  ;;  %1091 = vmatprep.subr.bf16.mxu0 %v1090_v39  ;;  %1110 = vmatprep.subr.bf16.mxu1 %v1090_v39 }
 0x156   : > { %v518_v41 = vpop.f32.mrb[11].mxu0  ;;  %1093 = vmatpush3.bf16.msra.mxu0 %v1090_v39  ;;  %1118 = vmatpush3.bf16.msra.mxu1 %v1090_v39 }
 0x157   : > { %v1094_v42 = vpack.c.bf16 %v1015_v40, %v518_v41 }
 0x159   : > { %v1018_v43 = vpop.f32.mrb[12].mxu0  ;;  %1095 = vmatprep.subr.bf16.mxu0 %v1094_v42  ;;  %1111 = vmatprep.subr.bf16.mxu1 %v1094_v42 }
 0x15a   : > { %v528_v44 = vpop.f32.mrb[13].mxu0  ;;  %1097 = vmatpush3.bf16.msra.mxu0 %v1094_v42  ;;  %1119 = vmatpush3.bf16.msra.mxu1 %v1094_v42 }
 0x15b   : > { %v1098_v45 = vpack.c.bf16 %v1018_v43, %v528_v44 }
 0x15d   : > { %v1021_v46 = vpop.f32.mrb[14].mxu0  ;;  %1099 = vmatprep.subr.bf16.mxu0 %v1098_v45  ;;  %1112 = vmatprep.subr.bf16.mxu1 %v1098_v45 }
 0x15e   : > { %v538_v47 = vpop.f32.mrb[15].mxu0  ;;  %1101 = vmatpush3.bf16.msra.mxu0 %v1098_v45  ;;  %1120 = vmatpush3.bf16.msra.mxu1 %v1098_v45 }
 0x15f   : > { %v1102_v48 = vpack.c.bf16 %v1021_v46, %v538_v47 }
 0x161   : > { %1103 = vmatprep.subr.bf16.mxu0 %v1102_v48  ;;  %1113 = vmatprep.subr.bf16.mxu1 %v1102_v48 }
 0x162   : > { %1105 = vmatpush3.bf16.msra.mxu0 %v1102_v48  ;;  %1121 = vmatpush3.bf16.msra.mxu1 %v1102_v48 }
 0x165   : > { %1058 = vmatmul.mubr.f32.vlgmr.msra.gmra.mrb[0].mxu1 %v558_v49  ;;  %1055 = vmatmul.mubr.f32.vlgmr.msra.gmra.mrb[16].mxu0 %v556_v50 }
 0x166   : > { %1060 = vmatprep.mubr.f32.mxu1 %v559_v51 }
 0x169   : > { %1061 = vmatmul.mubr.f32.gmra.mrb[2].mxu1 %v560_v52 }
 0x16a   : > { %1063 = vmatprep.mubr.f32.mxu1 %v561_v53 }
 0x16d   : > { %1064 = vmatmul.mubr.f32.gmra.mrb[4].mxu1 %v562_v54 }
 0x238   : > { %v1059_v59 = vpop.f32.mrb[0].mxu1  ;;  %v1056_v60 = vpop.f32.mrb[16].mxu0 }
 0x239   : > { %v671_v61 = vadd.f32 %v1059_v59, %v550_v55  ;;  %v639_v62 = vpop.f32.mrb[1].mxu1  ;;  %v669_v63 = vadd.f32 %v1056_v60, %v548_v56  ;;  %v629_v0 = vpop.f32.mrb[17].mxu0 }
 0x23a   : > { %v670_v1 = vadd.f32 %v639_v62, %v549_v57  ;;  %v668_v3 = vadd.f32 %v629_v0, %v547_v58 }
 0x23b   : > { %679 = vst [vmem:[#allocation2 + $0x18] sm:$0xff] %v671_v61  ;;  %677 = vst [vmem:[#allocation2 + $0x8] sm:$0xff] %v669_v63 }
 0x23c   : > { %678 = vst [vmem:[#allocation2 + $0x10] sm:$0xff] %v670_v1  ;;  %v1062_v5 = vpop.f32.mrb[2].mxu1  ;;  %676 = vst [vmem:[#allocation2] sm:$0xff] %v668_v3 }
 0x23d   : > { %v673_v6 = vadd.f32 %v1062_v5, %v552_v2  ;;  %v649_v7 = vpop.f32.mrb[3].mxu1 }
 0x23e   : > { %v672_v8 = vadd.f32 %v649_v7, %v551_v4  ;;  %687 = sbr.rel (%p936_p2) target bundleno = 611 (0x263), region = 52 }
 0x23f   : > { %681 = vst [vmem:[#allocation2 + $0x28] sm:$0xff] %v673_v6 }
 0x240   : > { %680 = vst [vmem:[#allocation2 + $0x20] sm:$0xff] %v672_v8  ;;  %v1065_v11 = vpop.f32.mrb[4].mxu1 }
 0x241   : > { %v675_v12 = vadd.f32 %v1065_v11, %v554_v9  ;;  %v659_v13 = vpop.f32.mrb[5].mxu1 }
 0x242   : > { %v674_v14 = vadd.f32 %v659_v13, %v553_v10  ;;  %v689_v16 = vld [vmem:[#allocation2 + $0x8] sm:$0xff] (!%p936_p2)  ;;  %v691_v22 = vld [vmem:[#allocation2 + $0x18] sm:$0xff] (!%p936_p2) }
 0x243   : > { %683 = vst [vmem:[#allocation2 + $0x38] sm:$0xff] %v675_v12  ;;  %v688_v15 = vld [vmem:[#allocation2] sm:$0xff] (!%p936_p2)  ;;  %v690_v17 = vld [vmem:[#allocation2 + $0x10] sm:$0xff] (!%p936_p2)  ;;  %697 = vst [vmem:[%s1628_s16 + $0x8] sm:$0xff] (!%p936_p2), %v689_v16  ;;  %v718_v20 = vmul.f32 (!%p936_p2), %v689_v16, %v689_v16  ;;  %v720_v29 = vmul.f32 (!%p936_p2), %v691_v22, %v691_v22 }
 0x244   : > { %682 = vst [vmem:[#allocation2 + $0x30] sm:$0xff] %v674_v14  ;;  %696 = vst [vmem:[%s1628_s16] sm:$0xff] (!%p936_p2), %v688_v15  ;;  %v717_v18 = vmul.f32 (!%p936_p2), %v688_v15, %v688_v15  ;;  %v704_v19 = vadd.f32 (!%p936_p2), %v689_v16, %v688_v15  ;;  %v719_v21 = vmul.f32 (!%p936_p2), %v690_v17, %v690_v17 }
 0x245   : > { %698 = vst [vmem:[%s1628_s16 + $0x10] sm:$0xff] %v690_v17  ;;  %699 = vst [vmem:[%s1628_s16 + $0x18] sm:$0xff] %v691_v22 }
 0x246   : > { %v693_v24 = vld [vmem:[#allocation2 + $0x28] sm:$0xff]  ;;  %v725_v27 = vadd.f32 %v718_v20, %v717_v18  ;;  %v705_v28 = vadd.f32 %v704_v19, %v690_v17 }
 0x247   : > { %v692_v23 = vld [vmem:[#allocation2 + $0x20] sm:$0xff]  ;;  %701 = vst [vmem:[%s1628_s16 + $0x28] sm:$0xff] %v693_v24  ;;  %v722_v35 = vmul.f32 %v693_v24, %v693_v24 }
 0x248   : > { %700 = vst [vmem:[%s1628_s16 + $0x20] sm:$0xff] %v692_v23  ;;  %v726_v30 = vadd.f32 %v725_v27, %v719_v21  ;;  %v706_v31 = vadd.f32 %v705_v28, %v691_v22  ;;  %v721_v32 = vmul.f32 %v692_v23, %v692_v23 }
 0x24a   : > { %v695_v26 = vld [vmem:[#allocation2 + $0x38] sm:$0xff]  ;;  %v727_v33 = vadd.f32 %v726_v30, %v720_v29  ;;  %v707_v34 = vadd.f32 %v706_v31, %v692_v23 }
 0x24b   : > { %v694_v25 = vld [vmem:[#allocation2 + $0x30] sm:$0xff]  ;;  %703 = vst [vmem:[%s1628_s16 + $0x38] sm:$0xff] %v695_v26  ;;  %v724_v41 = vmul.f32 %v695_v26, %v695_v26 }
 0x24c   : > { %702 = vst [vmem:[%s1628_s16 + $0x30] sm:$0xff] %v694_v25  ;;  %v728_v36 = vadd.f32 %v727_v33, %v721_v32  ;;  %v708_v37 = vadd.f32 %v707_v34, %v693_v24  ;;  %v723_v38 = vmul.f32 %v694_v25, %v694_v25 }
 0x24e   : > { %v729_v39 = vadd.f32 %v728_v36, %v722_v35  ;;  %v709_v40 = vadd.f32 %v708_v37, %v694_v25 }
 0x250   : > { %v730_v42 = vadd.f32 %v729_v39, %v723_v38  ;;  %v710_v43 = vadd.f32 %v709_v40, %v695_v26 }
 0x252   : > { %v711_v44 = vrot.slane %v710_v43, 4  ;;  %v731_v45 = vadd.f32 %v730_v42, %v724_v41 }
 0x254   : > { %v712_v46 = vadd.f32 %v711_v44, %v710_v43  ;;  %v732_v47 = vrot.slane %v731_v45, 4 }
 0x256   : > { %v713_v48 = vrot.slane %v712_v46, 2  ;;  %v733_v49 = vadd.f32 %v732_v47, %v731_v45 }
 0x258   : > { %v714_v50 = vadd.f32 %v713_v48, %v712_v46  ;;  %v734_v51 = vrot.slane %v733_v49, 2 }
 0x25a   : > { %v715_v52 = vrot.slane %v714_v50, 1  ;;  %v735_v53 = vadd.f32 %v734_v51, %v733_v49 }
 0x25c   : > { %v716_v54 = vadd.f32 %v715_v52, %v714_v50  ;;  %v736_v55 = vrot.slane %v735_v53, 1 }
 0x25e   : > { %v737_v56 = vadd.f32 %v736_v55, %v735_v53 }
 0x260   : > { %v739_v57 = vsel %vm738_vm1, %v716_v54, %v737_v56 }
 0x261   : > { %v741_v58 = vsel %vm740_vm2, %v739_v57, 0.0 }
 0x262   : > { %742 = vst [vmem:[%s1630_s14] sm:$0xff] %v741_v58 }
 0x263 PF: > { %s945_s25 = sshll.u32 %s1407_s26, 10  ;;  %s762_s13 = sshll.u32 %s1628_s16, 4  ;;  %s1702_s13 = int_to_ptr.vmem [resolvable:$true] %s762_s13 }
 0x264   : > { %s1699_s23 = scalar_lea.hbm %s1795_s5, %s945_s25  ;;  %s744_s9 = scalar_lea.sflag [#allocation5], %s1618_s7 }
 0x265   : > { %s1265_s10 = scalar_lea.vmem %s1702_s13, 1024  ;;  %p1814_p0 = scmp.ne.s32.totalorder %s1807_s17, 0 }
 0x266   : > { %p1266_p4 = scmp.ne.s32.totalorder %s1702_s13, %s1265_s10  ;;  %s1426_s30 = smov [#allocation6]  }
 0x267   : > { %s1269_s12 = sshll.u32 %s1426_s30, 4  ;;  %s1270_s12 = int_to_ptr.vmem [resolvable:$false] %s1269_s12 }
 0x268   : > { %p1267_p1 = pnand %p1266_p4, %p1814_p0  ;;  %s1271_s11 = scalar_lea.vmem %s1270_s12, 2048 }
 0x269   : > { %p1272_p8 = scmp.lt.s32.totalorder %s1702_s13, %s1270_s12  ;;  %p1273_p3 = scmp.lt.s32.totalorder %s1271_s11, %s1265_s10 }
 0x26a   : > { %p1268_p5 = pneg %p1267_p1 }
 0x26b   : > { %p1274_p10 = por %p1273_p3, %p1272_p8 }
 0x26d   : > { %p1275_p11 = pnand %p1274_p10, %p1268_p5 }
 0x26f   : > { %1278 = shalt.err (!%p1275_p11)
}
 0x270   : > { %s1279_s16 = scalar_lea.hbm %s1699_s23, 1024  ;;  %s1283_s8 = scalar_lea.hbm %s1795_s5, 4096 }
 0x271   : > { %p1280_p6 = scmp.ne.s32.totalorder %s1699_s23, %s1279_s16  ;;  %p1284_p12 = scmp.lt.u32.totalorder %s1699_s23, %s1795_s5 }
 0x272   : > { %p1285_p7 = scmp.lt.u32.totalorder %s1283_s8, %s1279_s16  ;;  %p1287_p4 = scmp.lt.u32.totalorder %s1279_s16, %s1699_s23 }
 0x273   : > { %p1281_p9 = pnand %p1280_p6, %p1814_p0 }
 0x274   : > { %p1286_p2 = por %p1285_p7, %p1284_p12 }
 0x275   : > { %p1282_p13 = pneg %p1281_p9 }
 0x276   : > { %p1288_p1 = por %p1287_p4, %p1286_p2 }
 0x278   : > { %p1289_p5 = pnand %p1288_p1, %p1282_p13 }
 0x27a   : > { %1292 = shalt.err (!%p1289_p5)
}
 0x27b   : > { %s1427_s10 = smov 128   ;;  %s1428_s12 = smov 8  }
 0x27c   : > { %1124 = dma.vmem_to_hbm [thread:$0]  (%p1814_p0), %s1702_s13, 1024, %s1699_s23, %s744_s9, %s1427_s10, %s1427_s10, %s1428_s12  }
 0x27d   : > { %s941_s11 = sshll.u32 %s1407_s26, 7  ;;  %s778_s18 = sshll.u32 %s1630_s14, 4  ;;  %s779_s18 = int_to_ptr.vmem [resolvable:$true] %s778_s18 }
 0x27e   : > { %s1733_s8 = scalar_lea.hbm %s1796_s6, %s941_s11  ;;  %s749_s15 = scalar_lea.sflag [#allocation8], %s1618_s7 }
 0x27f   : > { %s1293_s30 = scalar_lea.vmem %s779_s18, 128  ;;  %s1429_s0 = smov [#allocation7]  }
 0x280   : > { %p1294_p8 = scmp.ne.s32.totalorder %s779_s18, %s1293_s30  ;;  %s1297_s1 = sshll.u32 %s1429_s0, 4  ;;  %s1298_s1 = int_to_ptr.vmem [resolvable:$false] %s1297_s1 }
 0x281   : > { %s1299_s2 = scalar_lea.vmem %s1298_s1, 256  ;;  %p1300_p11 = scmp.lt.s32.totalorder %s779_s18, %s1298_s1 }
 0x282   : > { %p1295_p3 = pnand %p1294_p8, %p1814_p0  ;;  %p1301_p6 = scmp.lt.s32.totalorder %s1299_s2, %s1293_s30 }
 0x284   : > { %p1296_p10 = pneg %p1295_p3  ;;  %p1302_p9 = por %p1301_p6, %p1300_p11 }
 0x286   : > { %p1303_p13 = pnand %p1302_p9, %p1296_p10 }
 0x288   : > { %1306 = shalt.err (!%p1303_p13)
}
 0x289   : > { %s1307_s26 = scalar_lea.hbm %s1733_s8, 128  ;;  %s1311_s0 = scalar_lea.hbm %s1796_s6, 512 }
 0x28a   : > { %p1308_p12 = scmp.ne.s32.totalorder %s1733_s8, %s1307_s26  ;;  %p1312_p4 = scmp.lt.u32.totalorder %s1733_s8, %s1796_s6 }
 0x28b   : > { %p1313_p1 = scmp.lt.u32.totalorder %s1311_s0, %s1307_s26  ;;  %p1315_p8 = scmp.lt.u32.totalorder %s1307_s26, %s1733_s8 }
 0x28c   : > { %p1309_p7 = pnand %p1308_p12, %p1814_p0 }
 0x28d   : > { %p1314_p5 = por %p1313_p1, %p1312_p4 }
 0x28e   : > { %p1310_p2 = pneg %p1309_p7 }
 0x28f   : > { %p1316_p3 = por %p1315_p8, %p1314_p5 }
 0x291   : > { %p1317_p10 = pnand %p1316_p3, %p1310_p2 }
 0x293   : > { %1320 = shalt.err (!%p1317_p10)
}
 0x294   : > { %1125 = dma.vmem_to_hbm [thread:$0]  (%p1814_p0), %s779_s18, 128, %s1733_s8, %s749_s15  }
 0x295 PF: > { %p1140_p11 = scmp.ge.s32.totalorder %s1419_s29, 2  ;;  %s790_s2 = sand.u32 1, %s1379_s21  }
 0x296   : > { %p1815_p6 = scmp.ne.s32.totalorder %s1809_s20, 0  ;;  %s791_s13 = scalar_lea.sflag [#allocation5], %s790_s2 }
 0x298   : > { %p1133_p9 = pnand %p1140_p11, %p1815_p6 }
 0x29a   : > { %1370 = dma.done.wait (!%p1133_p9), %s791_s13, 1024  }
 0x29b   : > { %1372 = vsyncadd (!%p1133_p9), %s791_s13, 4294966272  ;;  %s800_s9 = scalar_lea.sflag [#allocation8], %s790_s2 }
 0x29c   : > { %1374 = dma.done.wait (!%p1133_p9), %s800_s9, 128  }
 0x29d   : > { %1376 = vsyncadd (!%p1133_p9), %s800_s9, 4294967168  ;;  %s26_s29 = sadd.s32 1, %s1419_s29   ;;  %s1816_s17 = sld [smem:[#allocation14_spill]] }
 0x29e   : > { %p23_p13 = scmp.ge.s32.totalorder %s26_s29, 10   ;;  %s1817_s10 = sld [smem:[#allocation12_spill]] }
 0x29f   : > { %s1818_s20 = sld [smem:[#allocation13_spill]]  ;;  %s1819_s21 = smov %s1383_s22 }
 0x2a0   : > { %s1820_s22 = smov %s1387_s3  ;;  %s1822_s23 = smov %s1395_s4 }
 0x2a1   : > { %s1823_s4 = smov %s1399_s24  ;;  %s1824_s24 = smov %s1555_s19 }
 0x2a2   : > { %s1825_s25 = smov %s1411_s27  ;;  %s1826_s26 = smov %s1415_s28 }
 0x2a3   : > { %s1821_s3 = smov %s1816_s17  ;;  %25 = sbr.rel (!%p23_p13) target bundleno = 15 (0xf), region = 113 }
 0x2a4   : > { %s1827_s27 = smov %s1817_s10 }
 0x2a5   : > { %s1828_s28 = smov %s1818_s20 }
 0x2aa   :  { %805 = vsyncpa [#allocation4], 1 }
 0x2ab   :  { %807 = vsyncpa [#allocation4 + $0x1], 1 }
 0x2ac   :  { %808 = vsyncpa [#allocation5], 1 }
 0x2ad   :  { %810 = vsyncpa [#allocation5 + $0x1], 1 }
 0x2ae   :  { %811 = vsyncpa [#allocation8], 1 }
 0x2af   :  { %813 = vsyncpa [#allocation8 + $0x1], 1 }

</bundles_post_ra>
